<compile_context>
chip_gen: v7x
topology: tpu7x:2x2x1
jax: 0.10.0
libtpu: 0.0.40
codegen_flags: <defaults>
</compile_context>

<pallas_src>
import jax
import jax.numpy as jnp
from jax.experimental import pallas as pl
from jax.experimental.pallas import tpu as pltpu


# Below this element count a fused plain-XLA add beats the Pallas launch +
# per-grid-step (~0.35us) overhead.
_MIN_PALLAS_ELEMENTS = 16384

# Sublane packing per itemsize: f32 -> 8 rows/vreg, bf16 -> 16, int8 -> 32.
_SUBLANE_MULTIPLE = {4: 8, 2: 16, 1: 32}


def _rpe_kernel(x_ref, enc_ref, o_ref):
    # x_ref / o_ref: (tB, tC) tile of the flattened activations.
    # enc_ref: (1, tC) tile of the flattened positional encoding; broadcast
    # over the batch rows directly (no rank expansion needed).
    o_ref[...] = x_ref[...] + enc_ref[...]


def _tile_sizes(B, C, itemsize, target_block_bytes=4 << 20):
    """Pick (tB, tC): sublane-aligned batch tile, multiple-of-128 lane tile."""
    sub = _SUBLANE_MULTIPLE.get(itemsize, 8)
    tB = B if B < sub else sub  # full-dim escape hatch for tiny batch
    # Largest multiple of 128 keeping one block near target_block_bytes.
    max_tc = max(128, (target_block_bytes // (tB * itemsize)) // 128 * 128)
    if C <= 128:
        tC = C                              # full-dim escape hatch
    elif C % 128 == 0:
        tC = min(max_tc, C)
    else:
        tC = min(max_tc, (C // 128) * 128)  # partial edge block handles the tail
    return tB, tC


def relative_position_encoding(x, encoding):
    """x: (B, S, D); encoding: (max_len, D). Returns x + encoding[:S] (broadcast over B)."""
    B, S, D = x.shape
    enc = encoding[:S, :].astype(x.dtype)   # glue: slice parameter table to seq length

    # Tiny-problem fast path: Pallas launch overhead would dominate.
    if x.size < _MIN_PALLAS_ELEMENTS:
        return x + enc[None, :, :]

    C = S * D
    xf = x.reshape(B, C)        # lane-dense flattened layout (free, contiguous)
    encf = enc.reshape(1, C)
    itemsize = jnp.dtype(x.dtype).itemsize
    tB, tC = _tile_sizes(B, C, itemsize)

    # Column tiles outer, batch tiles inner: the enc block index only depends on
    # the (outer) column tile, so it stays resident across the inner batch loop.
    grid = (pl.cdiv(C, tC), pl.cdiv(B, tB))

    out = pl.pallas_call(
        _rpe_kernel,
        out_shape=jax.ShapeDtypeStruct((B, C), x.dtype),
        grid_spec=pltpu.PrefetchScalarGridSpec(
            num_scalar_prefetch=0,
            grid=grid,
            in_specs=[
                pl.BlockSpec((tB, tC), lambda c, b: (b, c)),   # x tile
                pl.BlockSpec((1, tC), lambda c, b: (0, c)),    # enc tile (batch-bcast)
            ],
            out_specs=pl.BlockSpec((tB, tC), lambda c, b: (b, c)),
        ),
        compiler_params=pltpu.CompilerParams(
            dimension_semantics=("parallel", "parallel"),  # pure map: shard across TCs
            vmem_limit_bytes=32 * 1024 * 1024,             # ~17-20 MiB used; headroom on v7x
        ),
    )(xf, encf)
    return out.reshape(B, S, D)


if __name__ == "__main__":
    key = jax.random.PRNGKey(0)
    k1, k2, k3, k4, k5, k6 = jax.random.split(key, 6)

    def reference(x, encoding):
        s = x.shape[1]
        return x + encoding[:s, :][None, :, :]

    # 1) Module-consistent tiny shapes (batch=2, num_signals=8, hidden=32,
    #    max_len=16) -> takes the plain-JAX fast path.
    x_small = jax.random.normal(k1, (2, 8, 32), dtype=jnp.float32)
    enc_small = jax.random.normal(k2, (16, 32), dtype=jnp.float32)
    out_small = jax.block_until_ready(relative_position_encoding(x_small, enc_small))
    assert out_small.shape == (2, 8, 32)
    assert jnp.allclose(out_small, reference(x_small, enc_small), atol=1e-6)

    # 2) Larger lane-dense case -> Pallas path (C = 64*128 = 8192, mult of 128).
    x_big = jax.random.normal(k3, (16, 64, 128), dtype=jnp.float32)
    enc_big = jax.random.normal(k4, (64, 128), dtype=jnp.float32)
    out_big = jax.block_until_ready(relative_position_encoding(x_big, enc_big))
    assert out_big.shape == (16, 64, 128)
    assert jnp.allclose(out_big, reference(x_big, enc_big), atol=1e-6)

    # 3) Ragged flatten -> Pallas path with a partial edge block along the lane
    #    axis (C = 50*40 = 2000, not a multiple of 128).
    x_rag = jax.random.normal(k5, (16, 50, 40), dtype=jnp.float32)
    enc_rag = jax.random.normal(k6, (64, 40), dtype=jnp.float32)
    out_rag = jax.block_until_ready(relative_position_encoding(x_rag, enc_rag))
    assert out_rag.shape == (16, 50, 40)
    assert jnp.allclose(out_rag, reference(x_rag, enc_rag), atol=1e-6)

    print("KERNEL_OK")
</pallas_src>

<mosaic_0001>
module attributes {stable_mosaic.version = 11 : i64} {
  func.func @_rpe_kernel(%arg0: i32, %arg1: i32, %arg2: memref<8x8192xf32, #tpu.memory_space<vmem>>, %arg3: memref<1x8192xf32, #tpu.memory_space<vmem>>, %arg4: memref<8x8192xf32, #tpu.memory_space<vmem>>) attributes {dimension_semantics = [#tpu.dimension_semantics<parallel>, #tpu.dimension_semantics<parallel>], iteration_bounds = array<i64: 1, 2>, scalar_prefetch = 0 : i64, scratch_operands = 0 : i64, tpu.core_type = #tpu.core_type<tc>, window_params = [{transform_indices = @transform_0, window_bounds = array<i64: 8, 8192>}, {transform_indices = @transform_1, window_bounds = array<i64: 1, 8192>}, {transform_indices = @transform_2, window_bounds = array<i64: 8, 8192>}]} {
    %c0 = arith.constant 0 : index
    %c0_0 = arith.constant 0 : index
    %0 = vector.load %arg2[%c0, %c0_0] : memref<8x8192xf32, #tpu.memory_space<vmem>>, vector<8x8192xf32>
    %c0_1 = arith.constant 0 : index
    %c0_2 = arith.constant 0 : index
    %1 = vector.load %arg3[%c0_1, %c0_2] : memref<1x8192xf32, #tpu.memory_space<vmem>>, vector<1x8192xf32>
    %2 = vector.broadcast %1 : vector<1x8192xf32> to vector<8x8192xf32>
    %3 = arith.addf %0, %2 : vector<8x8192xf32>
    %c0_3 = arith.constant 0 : index
    %c0_4 = arith.constant 0 : index
    %4 = vector.load %arg4[%c0_3, %c0_4] : memref<8x8192xf32, #tpu.memory_space<vmem>>, vector<8x8192xf32>
    tpu.vector_store %arg4[%c0_3, %c0_4], %3 {strides = array<i32>} : memref<8x8192xf32, #tpu.memory_space<vmem>>, vector<8x8192xf32>,
    return
  }
  func.func @transform_0(%arg0: i32, %arg1: i32) -> (i32, i32) {
    %c0_i32 = arith.constant 0 : i32
    return %arg1, %arg0 : i32, i32
  }
  func.func @transform_1(%arg0: i32, %arg1: i32) -> (i32, i32) {
    %c0_i32 = arith.constant 0 : i32
    %c0_i32_0 = arith.constant 0 : i32
    return %c0_i32, %arg0 : i32, i32
  }
  func.func @transform_2(%arg0: i32, %arg1: i32) -> (i32, i32) {
    %c0_i32 = arith.constant 0 : i32
    return %arg1, %arg0 : i32, i32
  }
}

</mosaic_0001>

<bundles_post_ra>
// kernel: tpu_custom_call.1
= control target key start
LH: loop header
LB: loop body
LE: loop exit
PB: predicated region body
PF: predicated region fallthrough
CT: control target
= control target key end

     0   :  { %7 = vsyncpa [#allocation3], 0  ;;  %s1532_s0 = inlined_call_operand.hbm [shape: f32[16,8192], index: 0, kind: input, shape index: {}]   ;;  %s1533_s1 = inlined_call_operand.hbm [shape: f32[1,8192], index: 1, kind: input, shape index: {}]   ;;  %s1534_s2 = inlined_call_operand.hbm [shape: f32[16,8192], index: 2, kind: output, shape index: {}]  }
   0x1   :  { %9 = vsyncpa [#allocation3 + $0x1], 0 }
   0x2   :  { %10 = vsyncpa [#allocation6], 0 }
   0x3   :  { %11 = vsyncpa [#allocation4], 0 }
   0x4   :  { %13 = vsyncpa [#allocation4 + $0x1], 0  ;;  %s1099_s9 = smov 0   ;;  %s1101_s10 = smov 0  }
   0x5   :  { %s1103_s11 = smov 0   ;;  %s1105_s12 = smov 0  }
   0x6   :  { %s1107_s13 = smov 0   ;;  %s1109_s14 = smov 0  }
   0x7 LB: > { %s843_s15 = sadd.s32 4294967295, %s1079_s14   ;;  %s844_s16 = sadd.s32 4294967294, %s1079_s14   ;;  %s1079_s14 = sphi %s1109_s14, %s19_s14   ;;  %s1075_s13 = sphi %s1107_s13, %s1559_s13   ;;  %s1071_s12 = sphi %s1105_s12, %s1558_s12   ;;  %s1067_s11 = sphi %s1103_s11, %s1557_s11   ;;  %s1063_s10 = sphi %s1101_s10, %s1556_s10   ;;  %s1059_s9 = sphi %s1099_s9, %s1555_s9  }
   0x8   : > { %p53_p0 = scmp.ne.s32.totalorder %s1063_s10, %s1059_s9  ;;  %p1133_p1 = scmp.eq.s32.totalorder %s843_s15, 0 }
   0x9   : > { %p1137_p2 = scmp.eq.s32.totalorder %s843_s15, 1  ;;  %p111_p3 = scmp.eq.s32.totalorder %s844_s16, 1 }
   0xa   : > { %s1539_s17 = scalar_select %p1133_p1, 1, 0 }
   0xb   : > { %s1540_s18 = scalar_select %p1137_p2, 1, 0 }
   0xc   : > { %p1143_p4 = por %p1133_p1, %p53_p0  ;;  %p845_p5 = scmp.ge.s32.totalorder %s1079_s14, 1 }
   0xd   : > { %p1148_p6 = por %p111_p3, %p53_p0  ;;  %p118_p7 = scmp.lt.s32.totalorder %s1079_s14, 3 }
   0xe   : > { %s1541_s19 = scalar_select %p1143_p4, 1, 0 }
   0xf   : > { %s1542_s20 = scalar_select %p1148_p6, 1, 0 }
  0x10   : > { %p1153_p8 = pnand %p845_p5, %p118_p7  ;;  %s1081_s22 = smov [#allocation5]  }
  0x11   : > { %s134_s23 = sshll.u32 %s1081_s22, 4  ;;  %s28_s25 = sadd.s32 1, %s1075_s13  ;;  %s135_s23 = int_to_ptr.vmem [resolvable:$true] %s134_s23 }
  0x12   : > { %s1543_s21 = scalar_select %p1153_p8, 1, 0 }
  0x13   : > { %p870_p10 = pneg %p1153_p8  ;;  %s40_s26 = sadd.s32 1, %s1067_s11 }
  0x14   : > { %p1168_p12 = scmp.ge.s32.totalorder %s28_s25, 2  ;;  %s935_s30 = scalar_lea.hbm %s1533_s1, 1024 }
  0x15   : > { %p1162_p11 = pnand %p870_p10, %p1133_p1  ;;  %p936_p13 = scmp.ne.s32.totalorder %s1533_s1, %s935_s30 }
  0x16   : > { %s1545_s27 = scalar_select %p1168_p12, 1, 0 }
  0x17   : > { %p937_p0 = pneg %p1162_p11  ;;  %p942_p7 = scmp.lt.u32.totalorder %s935_s30, %s1533_s1 }
  0x19   : > { %p938_p3 = pnand %p937_p0, %p936_p13 }
  0x1b   : > { %p939_p5 = pneg %p938_p3 }
  0x1d   : > { %p944_p10 = pnand %p942_p7, %p939_p5 }
  0x1f   : > { %947 = shalt.err (!%p944_p10)
}
  0x20   : > { %s948_s7 = scalar_lea.vmem %s135_s23, 1024  ;;  %p956_p4 = scmp.lt.s32.totalorder %s135_s23, %s135_s23 }
  0x21   : > { %p949_p9 = scmp.ne.s32.totalorder %s135_s23, %s948_s7  ;;  %p957_p8 = scmp.lt.s32.totalorder %s948_s7, %s948_s7 }
  0x23   : > { %p951_p6 = pnand %p949_p9, %p937_p0  ;;  %p958_p2 = por %p957_p8, %p956_p4 }
  0x25   : > { %p952_p1 = pneg %p951_p6 }
  0x27   : > { %p959_p12 = pnand %p958_p2, %p952_p1 }
  0x29   : > { %962 = shalt.err (!%p959_p12)
}
  0x2a   : > { %873 = dma.hbm_to_vmem [thread:$0]  (!%p1162_p11), %s1533_s1, 1024, %s135_s23, [#allocation6]  }
  0x2b   : > { %p1546_p4 = scmp.ne.s32.totalorder %s1545_s27, 0  ;;  %p47_p1 = scmp.ne.s32.totalorder %s1067_s11, %s1063_s10 }
  0x2c   : > { %p48_p2 = scmp.eq.s32.totalorder %s1079_s14, 0  ;;  %p883_p6 = scmp.lt.s32.totalorder %s1079_s14, 2 }
  0x2d   : > { %s1561_s25 = smov (%p1546_p4, %s28_s25), 0  ;;  %p1547_p12 = scmp.ne.s32.totalorder %s1540_s18, 0 }
  0x2e   : > { %s35_s16 = ssub.s32 %s1075_s13, %s1561_s25  ;;  %p49_p9 = por %p48_p2, %p47_p1 }
  0x2f   : > { %p38_p8 = scmp.eq.s32.totalorder %s35_s16, 0  ;;  %p1200_p13 = por %p1547_p12, %p47_p1 }
  0x30   : > { %s145_s24 = sand.u32 1, %s1067_s11   ;;  %s860_s27 = sshll.u32 %s1075_s13, 13 }
  0x31   : > { %s1208_s28 = scalar_select %p38_p8, %s1067_s11, %s40_s26  }
  0x32   : > { %s848_s23 = sshll.u32 %s145_s24, 9  ;;  %s1214_s3 = scalar_lea.hbm %s1532_s0, %s860_s27 }
  0x33   : > { %s149_s18 = scalar_lea.vmem [#allocation2], %s848_s23  ;;  %p1218_p11 = pnand %p883_p6, %p49_p9 }
  0x34   : > { %s159_s4 = sshll.u32 %s149_s18, 4  ;;  %s146_s26 = scalar_lea.sflag [#allocation3], %s145_s24  ;;  %s1216_s4 = int_to_ptr.vmem [resolvable:$true] %s159_s4 }
  0x35   : > { %s963_s6 = scalar_lea.hbm %s1214_s3, 8192  ;;  %p965_p3 = pneg %p1218_p11 }
  0x36   : > { %p964_p0 = scmp.ne.s32.totalorder %s1214_s3, %s963_s6  ;;  %s968_s15 = scalar_lea.hbm %s1532_s0, 16384 }
  0x37   : > { %p969_p10 = scmp.lt.u32.totalorder %s1214_s3, %s1532_s0  ;;  %p970_p4 = scmp.lt.u32.totalorder %s968_s15, %s963_s6 }
  0x38   : > { %p966_p5 = pnand %p965_p3, %p964_p0  ;;  %p972_p2 = scmp.lt.u32.totalorder %s963_s6, %s1214_s3 }
  0x39   : > { %p971_p1 = por %p970_p4, %p969_p10 }
  0x3a   : > { %p967_p7 = pneg %p966_p5 }
  0x3b   : > { %p973_p6 = por %p972_p2, %p971_p1 }
  0x3d   : > { %p974_p8 = pnand %p973_p6, %p967_p7 }
  0x3f   : > { %977 = shalt.err (!%p974_p8)
}
  0x40   : > { %s978_s24 = scalar_lea.vmem %s1216_s4, 8192  ;;  %s1082_s27 = smov [#allocation2]  }
  0x41   : > { %p979_p9 = scmp.ne.s32.totalorder %s1216_s4, %s978_s24  ;;  %s983_s29 = sshll.u32 %s1082_s27, 4  ;;  %s984_s29 = int_to_ptr.vmem [resolvable:$false] %s983_s29 }
  0x42   : > { %s985_s30 = scalar_lea.vmem %s984_s29, 16384  ;;  %p986_p5 = scmp.lt.s32.totalorder %s1216_s4, %s984_s29 }
  0x43   : > { %p981_p12 = pnand %p979_p9, %p965_p3  ;;  %p987_p10 = scmp.lt.s32.totalorder %s985_s30, %s978_s24 }
  0x45   : > { %p982_p0 = pneg %p981_p12  ;;  %p988_p4 = por %p987_p10, %p986_p5 }
  0x47   : > { %p989_p1 = pnand %p988_p4, %p982_p0 }
  0x49   : > { %992 = shalt.err (!%p989_p1)
}
  0x4a   : > { %877 = dma.hbm_to_vmem [thread:$0]  (!%p1218_p11), %s1214_s3, 8192, %s1216_s4, %s146_s26  }
  0x4b   : > { %p1550_p7 = scmp.ne.s32.totalorder %s1543_s21, 0 }
  0x4c   : > { %s1250_s18 = sand.u32 (!%p1550_p7), 1, %s1063_s10   ;;  %p1551_p3 = scmp.ne.s32.totalorder (!%p1550_p7), %s1541_s19, 0 }
  0x4d   : > { %168 = sbr.rel (%p1550_p7) target bundleno = 149 (0x95), region = 28  ;;  %s852_s6 = sshll.u32 (!%p1550_p7), %s1250_s18, 9 }
  0x4e   : > { %s171_s7 = scalar_lea.sflag (!%p1550_p7), [#allocation3], %s1250_s18  ;;  %s1256_s8 = scalar_lea.vmem (!%p1550_p7), [#allocation2], %s852_s6 }
  0x54   : > { %1046 = dma.done.wait (%p1551_p3), %s171_s7, 8192  }
  0x55   : > { %1048 = vsyncadd (%p1551_p3), %s171_s7, 4294959104  ;;  %p1552_p11 = scmp.ne.s32.totalorder %s1539_s17, 0 }
  0x57   : > { %1050 = dma.done.wait (%p1552_p11), [#allocation6], 1024  }
  0x58   : > { %1052 = vsyncadd (%p1552_p11), [#allocation6], 4294966272  ;;  %v282_v0 = vlaneseq  ;;  %v202_v10 = vld [vmem:[%s1256_s8] sm:$0xff]  ;;  %v203_v12 = vld [vmem:[%s1256_s8 + $0x8] sm:$0xff]  ;;  %s1305_s17 = scalar_lea.vmem [#allocation7], %s852_s6  ;;  %s861_s19 = sshll.u32 %s1071_s12, 13 }
  0x59   : > { %v266_v11 = vld [vmem:[#allocation5] sm:$0xff]  ;;  %v204_v15 = vld [vmem:[%s1256_s8 + $0x10] sm:$0xff]  ;;  %v205_v17 = vld [vmem:[%s1256_s8 + $0x18] sm:$0xff]  ;;  %s747_s21 = sshll.u32 %s1305_s17, 4  ;;  %s1475_s4 = scalar_lea.hbm %s1534_s2, %s861_s19  ;;  %s1477_s21 = int_to_ptr.vmem [resolvable:$true] %s747_s21 }
  0x5a   : > { %v283_v1 = vshrl.u32 %v282_v0, 7  ;;  %v206_v19 = vld [vmem:[%s1256_s8 + $0x20] sm:$0xff]  ;;  %v207_v21 = vld [vmem:[%s1256_s8 + $0x28] sm:$0xff]  ;;  %v208_v23 = vld [vmem:[%s1256_s8 + $0x30] sm:$0xff]  ;;  %s731_s5 = scalar_lea.sflag [#allocation4], %s1250_s18  ;;  %s993_s26 = scalar_lea.vmem %s1477_s21, 8192 }
  0x5b   : > { %v209_v25 = vld [vmem:[%s1256_s8 + $0x38] sm:$0xff]  ;;  %v210_v31 = vld [vmem:[%s1256_s8 + $0x40] sm:$0xff]  ;;  %v267_v32 = vld [vmem:[#allocation5 + $0x8] sm:$0xff]  ;;  %p994_p2 = scmp.ne.s32.totalorder %s1477_s21, %s993_s26  ;;  %s1083_s15 = smov [#allocation7]  }
  0x5c   : > { %v1266_v2 = vsub.s32 0, %v283_v1  ;;  %v1268_v3 = vsub.s32 1, %v283_v1  ;;  %v1270_v4 = vsub.s32 2, %v283_v1  ;;  %v1272_v5 = vsub.s32 3, %v283_v1  ;;  %v211_v33 = vld [vmem:[%s1256_s8 + $0x48] sm:$0xff]  ;;  %v212_v38 = vld [vmem:[%s1256_s8 + $0x50] sm:$0xff] }
  0x5d   : > { %v1274_v6 = vsub.s32 4, %v283_v1  ;;  %v1276_v7 = vsub.s32 5, %v283_v1  ;;  %v1278_v8 = vsub.s32 6, %v283_v1  ;;  %v1280_v9 = vsub.s32 7, %v283_v1  ;;  %v213_v39 = vld [vmem:[%s1256_s8 + $0x58] sm:$0xff]  ;;  %v214_v40 = vld [vmem:[%s1256_s8 + $0x60] sm:$0xff]  ;;  %p995_p6 = pnand %p994_p2, %p1200_p13 }
  0x5e   : > { %v285_v13 = vrot.slane %v266_v11, %v1266_v2  ;;  %v289_v14 = vrot.slane %v266_v11, %v1268_v3  ;;  %v293_v16 = vrot.slane %v266_v11, %v1270_v4  ;;  %v297_v18 = vrot.slane %v266_v11, %v1272_v5  ;;  %v215_v45 = vld [vmem:[%s1256_s8 + $0x68] sm:$0xff]  ;;  %v216_v46 = vld [vmem:[%s1256_s8 + $0x70] sm:$0xff]  ;;  %v217_v47 = vld [vmem:[%s1256_s8 + $0x78] sm:$0xff]  ;;  %s997_s16 = sshll.u32 %s1083_s15, 4  ;;  %s998_s16 = int_to_ptr.vmem [resolvable:$false] %s997_s16 }
  0x5f   : > { %v301_v20 = vrot.slane %v266_v11, %v1274_v6  ;;  %v305_v22 = vrot.slane %v266_v11, %v1276_v7  ;;  %v309_v24 = vrot.slane %v266_v11, %v1278_v8  ;;  %v313_v26 = vrot.slane %v266_v11, %v1280_v9  ;;  %v268_v52 = vld [vmem:[#allocation5 + $0x10] sm:$0xff]  ;;  %v218_v57 = vld [vmem:[%s1256_s8 + $0x80] sm:$0xff]  ;;  %v219_v58 = vld [vmem:[%s1256_s8 + $0x88] sm:$0xff]  ;;  %p996_p8 = pneg %p995_p6  ;;  %s999_s23 = scalar_lea.vmem %s998_s16, 16384 }
  0x60   : > { %v602_v27 = vadd.f32 %v285_v13, %v202_v10  ;;  %v603_v28 = vadd.f32 %v289_v14, %v203_v12  ;;  %v604_v29 = vadd.f32 %v293_v16, %v204_v15  ;;  %v605_v30 = vadd.f32 %v297_v18, %v205_v17  ;;  %v220_v63 = vld [vmem:[%s1256_s8 + $0x90] sm:$0xff]  ;;  %v221_v0 = vld [vmem:[%s1256_s8 + $0x98] sm:$0xff]  ;;  %v222_v1 = vld [vmem:[%s1256_s8 + $0xa0] sm:$0xff]  ;;  %p1000_p9 = scmp.lt.s32.totalorder %s1477_s21, %s998_s16  ;;  %p1001_p12 = scmp.lt.s32.totalorder %s999_s23, %s993_s26 }
  0x61   : > { %v606_v34 = vadd.f32 %v301_v20, %v206_v19  ;;  %v607_v35 = vadd.f32 %v305_v22, %v207_v21  ;;  %v608_v36 = vadd.f32 %v309_v24, %v208_v23  ;;  %v609_v37 = vadd.f32 %v313_v26, %v209_v25  ;;  %v223_v14 = vld [vmem:[%s1256_s8 + $0xa8] sm:$0xff]  ;;  %v224_v15 = vld [vmem:[%s1256_s8 + $0xb0] sm:$0xff]  ;;  %v225_v16 = vld [vmem:[%s1256_s8 + $0xb8] sm:$0xff] }
  0x62   : > { %666 = vst [vmem:[%s1305_s17] sm:$0xff] %v602_v27  ;;  %667 = vst [vmem:[%s1305_s17 + $0x8] sm:$0xff] %v603_v28  ;;  %v317_v41 = vrot.slane %v267_v32, %v1266_v2  ;;  %v321_v42 = vrot.slane %v267_v32, %v1268_v3  ;;  %v325_v43 = vrot.slane %v267_v32, %v1270_v4  ;;  %v269_v21 = vld [vmem:[#allocation5 + $0x18] sm:$0xff]  ;;  %v226_v26 = vld [vmem:[%s1256_s8 + $0xc0] sm:$0xff]  ;;  %p1002_p0 = por %p1001_p12, %p1000_p9 }
  0x63   : > { %668 = vst [vmem:[%s1305_s17 + $0x10] sm:$0xff] %v604_v29  ;;  %669 = vst [vmem:[%s1305_s17 + $0x18] sm:$0xff] %v605_v30  ;;  %v329_v44 = vrot.slane %v267_v32, %v1272_v5  ;;  %v333_v48 = vrot.slane %v267_v32, %v1274_v6  ;;  %v337_v49 = vrot.slane %v267_v32, %v1276_v7  ;;  %v227_v27 = vld [vmem:[%s1256_s8 + $0xc8] sm:$0xff] }
  0x64   : > { %670 = vst [vmem:[%s1305_s17 + $0x20] sm:$0xff] %v606_v34  ;;  %671 = vst [vmem:[%s1305_s17 + $0x28] sm:$0xff] %v607_v35  ;;  %v341_v50 = vrot.slane %v267_v32, %v1278_v8  ;;  %v345_v51 = vrot.slane %v267_v32, %v1280_v9  ;;  %v610_v53 = vadd.f32 %v317_v41, %v210_v31  ;;  %v228_v32 = vld [vmem:[%s1256_s8 + $0xd0] sm:$0xff]  ;;  %v230_v34 = vld [vmem:[%s1256_s8 + $0xe0] sm:$0xff]  ;;  %p1003_p5 = pnand %p1002_p0, %p996_p8 }
  0x65   : > { %672 = vst [vmem:[%s1305_s17 + $0x30] sm:$0xff] %v608_v36  ;;  %673 = vst [vmem:[%s1305_s17 + $0x38] sm:$0xff] %v609_v37  ;;  %v611_v54 = vadd.f32 %v321_v42, %v211_v33  ;;  %v612_v55 = vadd.f32 %v325_v43, %v212_v38  ;;  %v613_v56 = vadd.f32 %v329_v44, %v213_v39  ;;  %v229_v33 = vld [vmem:[%s1256_s8 + $0xd8] sm:$0xff]  ;;  %v231_v39 = vld [vmem:[%s1256_s8 + $0xe8] sm:$0xff] }
  0x66   : > { %v614_v59 = vadd.f32 %v333_v48, %v214_v40  ;;  %v615_v60 = vadd.f32 %v337_v49, %v215_v45  ;;  %v616_v61 = vadd.f32 %v341_v50, %v216_v46  ;;  %v617_v62 = vadd.f32 %v345_v51, %v217_v47  ;;  %674 = vst [vmem:[%s1305_s17 + $0x40] sm:$0xff] %v610_v53  ;;  %v232_v40 = vld [vmem:[%s1256_s8 + $0xf0] sm:$0xff]  ;;  %v233_v41 = vld [vmem:[%s1256_s8 + $0xf8] sm:$0xff]  ;;  %v270_v46 = vld [vmem:[#allocation5 + $0x20] sm:$0xff] }
  0x67   : > { %675 = vst [vmem:[%s1305_s17 + $0x48] sm:$0xff] %v611_v54  ;;  %676 = vst [vmem:[%s1305_s17 + $0x50] sm:$0xff] %v612_v55  ;;  %v349_v10 = vrot.slane %v268_v52, %v1266_v2  ;;  %v353_v11 = vrot.slane %v268_v52, %v1268_v3  ;;  %v357_v12 = vrot.slane %v268_v52, %v1270_v4  ;;  %v234_v51 = vld [vmem:[%s1256_s8 + $0x100] sm:$0xff] }
  0x68   : > { %677 = vst [vmem:[%s1305_s17 + $0x58] sm:$0xff] %v613_v56  ;;  %v361_v13 = vrot.slane %v268_v52, %v1272_v5  ;;  %678 = vst [vmem:[%s1305_s17 + $0x60] sm:$0xff] %v614_v59  ;;  %v365_v17 = vrot.slane %v268_v52, %v1274_v6  ;;  %v369_v18 = vrot.slane %v268_v52, %v1276_v7  ;;  %v238_v59 = vld [vmem:[%s1256_s8 + $0x120] sm:$0xff] }
  0x69   : > { %679 = vst [vmem:[%s1305_s17 + $0x68] sm:$0xff] %v615_v60  ;;  %680 = vst [vmem:[%s1305_s17 + $0x70] sm:$0xff] %v616_v61  ;;  %v373_v19 = vrot.slane %v268_v52, %v1278_v8  ;;  %v377_v20 = vrot.slane %v268_v52, %v1280_v9  ;;  %v618_v22 = vadd.f32 %v349_v10, %v218_v57  ;;  %v235_v52 = vld [vmem:[%s1256_s8 + $0x108] sm:$0xff]  ;;  %v236_v57 = vld [vmem:[%s1256_s8 + $0x110] sm:$0xff] }
  0x6a   : > { %681 = vst [vmem:[%s1305_s17 + $0x78] sm:$0xff] %v617_v62  ;;  %v619_v23 = vadd.f32 %v353_v11, %v219_v58  ;;  %v620_v24 = vadd.f32 %v357_v12, %v220_v63  ;;  %v621_v25 = vadd.f32 %v361_v13, %v221_v0  ;;  %v622_v28 = vadd.f32 %v365_v17, %v222_v1  ;;  %v237_v58 = vld [vmem:[%s1256_s8 + $0x118] sm:$0xff]  ;;  %v239_v0 = vld [vmem:[%s1256_s8 + $0x128] sm:$0xff]  ;;  %v240_v1 = vld [vmem:[%s1256_s8 + $0x130] sm:$0xff] }
  0x6b   : > { %v623_v29 = vadd.f32 %v369_v18, %v223_v14  ;;  %v624_v30 = vadd.f32 %v373_v19, %v224_v15  ;;  %v625_v31 = vadd.f32 %v377_v20, %v225_v16  ;;  %682 = vst [vmem:[%s1305_s17 + $0x80] sm:$0xff] %v618_v22  ;;  %v381_v35 = vrot.slane %v269_v21, %v1266_v2  ;;  %v241_v10 = vld [vmem:[%s1256_s8 + $0x138] sm:$0xff]  ;;  %v271_v15 = vld [vmem:[#allocation5 + $0x28] sm:$0xff]  ;;  %v242_v20 = vld [vmem:[%s1256_s8 + $0x140] sm:$0xff] }
  0x6c   : > { %683 = vst [vmem:[%s1305_s17 + $0x88] sm:$0xff] %v619_v23  ;;  %684 = vst [vmem:[%s1305_s17 + $0x90] sm:$0xff] %v620_v24  ;;  %v385_v36 = vrot.slane %v269_v21, %v1268_v3  ;;  %v389_v37 = vrot.slane %v269_v21, %v1270_v4  ;;  %v393_v38 = vrot.slane %v269_v21, %v1272_v5 }
  0x6d   : > { %685 = vst [vmem:[%s1305_s17 + $0x98] sm:$0xff] %v621_v25  ;;  %686 = vst [vmem:[%s1305_s17 + $0xa0] sm:$0xff] %v622_v28  ;;  %v397_v42 = vrot.slane %v269_v21, %v1274_v6  ;;  %v401_v43 = vrot.slane %v269_v21, %v1276_v7  ;;  %v405_v44 = vrot.slane %v269_v21, %v1278_v8  ;;  %v246_v28 = vld [vmem:[%s1256_s8 + $0x160] sm:$0xff] }
  0x6e   : > { %687 = vst [vmem:[%s1305_s17 + $0xa8] sm:$0xff] %v623_v29  ;;  %688 = vst [vmem:[%s1305_s17 + $0xb0] sm:$0xff] %v624_v30  ;;  %v409_v45 = vrot.slane %v269_v21, %v1280_v9  ;;  %v626_v47 = vadd.f32 %v381_v35, %v226_v26  ;;  %v627_v48 = vadd.f32 %v385_v36, %v227_v27  ;;  %v243_v21 = vld [vmem:[%s1256_s8 + $0x148] sm:$0xff]  ;;  %v244_v26 = vld [vmem:[%s1256_s8 + $0x150] sm:$0xff] }
  0x6f   : > { %689 = vst [vmem:[%s1305_s17 + $0xb8] sm:$0xff] %v625_v31  ;;  %v628_v49 = vadd.f32 %v389_v37, %v228_v32  ;;  %v629_v50 = vadd.f32 %v393_v38, %v229_v33  ;;  %v630_v53 = vadd.f32 %v397_v42, %v230_v34  ;;  %v631_v54 = vadd.f32 %v401_v43, %v231_v39  ;;  %v245_v27 = vld [vmem:[%s1256_s8 + $0x158] sm:$0xff]  ;;  %v247_v33 = vld [vmem:[%s1256_s8 + $0x168] sm:$0xff]  ;;  %v248_v34 = vld [vmem:[%s1256_s8 + $0x170] sm:$0xff] }
  0x70   : > { %v632_v55 = vadd.f32 %v405_v44, %v232_v40  ;;  %v633_v56 = vadd.f32 %v409_v45, %v233_v41  ;;  %690 = vst [vmem:[%s1305_s17 + $0xc0] sm:$0xff] %v626_v47  ;;  %691 = vst [vmem:[%s1305_s17 + $0xc8] sm:$0xff] %v627_v48  ;;  %v413_v60 = vrot.slane %v270_v46, %v1266_v2  ;;  %v249_v35 = vld [vmem:[%s1256_s8 + $0x178] sm:$0xff]  ;;  %v272_v40 = vld [vmem:[#allocation5 + $0x30] sm:$0xff] }
  0x71   : > { %692 = vst [vmem:[%s1305_s17 + $0xd0] sm:$0xff] %v628_v49  ;;  %693 = vst [vmem:[%s1305_s17 + $0xd8] sm:$0xff] %v629_v50  ;;  %v417_v61 = vrot.slane %v270_v46, %v1268_v3  ;;  %v421_v62 = vrot.slane %v270_v46, %v1270_v4  ;;  %v425_v63 = vrot.slane %v270_v46, %v1272_v5  ;;  %v250_v45 = vld [vmem:[%s1256_s8 + $0x180] sm:$0xff] }
  0x72   : > { %694 = vst [vmem:[%s1305_s17 + $0xe0] sm:$0xff] %v630_v53  ;;  %695 = vst [vmem:[%s1305_s17 + $0xe8] sm:$0xff] %v631_v54  ;;  %v429_v11 = vrot.slane %v270_v46, %v1274_v6  ;;  %v433_v12 = vrot.slane %v270_v46, %v1276_v7  ;;  %v437_v13 = vrot.slane %v270_v46, %v1278_v8  ;;  %v254_v53 = vld [vmem:[%s1256_s8 + $0x1a0] sm:$0xff] }
  0x73   : > { %696 = vst [vmem:[%s1305_s17 + $0xf0] sm:$0xff] %v632_v55  ;;  %697 = vst [vmem:[%s1305_s17 + $0xf8] sm:$0xff] %v633_v56  ;;  %v441_v14 = vrot.slane %v270_v46, %v1280_v9  ;;  %v634_v16 = vadd.f32 %v413_v60, %v234_v51  ;;  %v635_v17 = vadd.f32 %v417_v61, %v235_v52  ;;  %v251_v46 = vld [vmem:[%s1256_s8 + $0x188] sm:$0xff]  ;;  %v252_v51 = vld [vmem:[%s1256_s8 + $0x190] sm:$0xff] }
  0x74   : > { %v636_v18 = vadd.f32 %v421_v62, %v236_v57  ;;  %v637_v19 = vadd.f32 %v425_v63, %v237_v58  ;;  %v638_v22 = vadd.f32 %v429_v11, %v238_v59  ;;  %v639_v23 = vadd.f32 %v433_v12, %v239_v0  ;;  %v253_v52 = vld [vmem:[%s1256_s8 + $0x198] sm:$0xff]  ;;  %v255_v58 = vld [vmem:[%s1256_s8 + $0x1a8] sm:$0xff]  ;;  %v256_v59 = vld [vmem:[%s1256_s8 + $0x1b0] sm:$0xff] }
  0x75   : > { %v640_v24 = vadd.f32 %v437_v13, %v240_v1  ;;  %v641_v25 = vadd.f32 %v441_v14, %v241_v10  ;;  %698 = vst [vmem:[%s1305_s17 + $0x100] sm:$0xff] %v634_v16  ;;  %699 = vst [vmem:[%s1305_s17 + $0x108] sm:$0xff] %v635_v17  ;;  %v445_v29 = vrot.slane %v271_v15, %v1266_v2  ;;  %v257_v60 = vld [vmem:[%s1256_s8 + $0x1b8] sm:$0xff]  ;;  %v258_v14 = vld [vmem:[%s1256_s8 + $0x1c0] sm:$0xff] }
  0x76   : > { %700 = vst [vmem:[%s1305_s17 + $0x110] sm:$0xff] %v636_v18  ;;  %701 = vst [vmem:[%s1305_s17 + $0x118] sm:$0xff] %v637_v19  ;;  %v449_v30 = vrot.slane %v271_v15, %v1268_v3  ;;  %v453_v31 = vrot.slane %v271_v15, %v1270_v4  ;;  %v457_v32 = vrot.slane %v271_v15, %v1272_v5  ;;  %v273_v1 = vld [vmem:[#allocation5 + $0x38] sm:$0xff] }
  0x77   : > { %702 = vst [vmem:[%s1305_s17 + $0x120] sm:$0xff] %v638_v22  ;;  %703 = vst [vmem:[%s1305_s17 + $0x128] sm:$0xff] %v639_v23  ;;  %v461_v36 = vrot.slane %v271_v15, %v1274_v6  ;;  %v465_v37 = vrot.slane %v271_v15, %v1276_v7  ;;  %v469_v38 = vrot.slane %v271_v15, %v1278_v8  ;;  %v262_v22 = vld [vmem:[%s1256_s8 + $0x1e0] sm:$0xff] }
  0x78   : > { %704 = vst [vmem:[%s1305_s17 + $0x130] sm:$0xff] %v640_v24  ;;  %705 = vst [vmem:[%s1305_s17 + $0x138] sm:$0xff] %v641_v25  ;;  %v473_v39 = vrot.slane %v271_v15, %v1280_v9  ;;  %v642_v41 = vadd.f32 %v445_v29, %v242_v20  ;;  %v643_v42 = vadd.f32 %v449_v30, %v243_v21  ;;  %v259_v15 = vld [vmem:[%s1256_s8 + $0x1c8] sm:$0xff]  ;;  %v260_v20 = vld [vmem:[%s1256_s8 + $0x1d0] sm:$0xff] }
  0x79   : > { %v644_v43 = vadd.f32 %v453_v31, %v244_v26  ;;  %v645_v44 = vadd.f32 %v457_v32, %v245_v27  ;;  %v646_v47 = vadd.f32 %v461_v36, %v246_v28  ;;  %v647_v48 = vadd.f32 %v465_v37, %v247_v33  ;;  %v261_v21 = vld [vmem:[%s1256_s8 + $0x1d8] sm:$0xff]  ;;  %v263_v27 = vld [vmem:[%s1256_s8 + $0x1e8] sm:$0xff]  ;;  %v264_v28 = vld [vmem:[%s1256_s8 + $0x1f0] sm:$0xff] }
  0x7a   : > { %v648_v49 = vadd.f32 %v469_v38, %v248_v34  ;;  %v649_v50 = vadd.f32 %v473_v39, %v249_v35  ;;  %706 = vst [vmem:[%s1305_s17 + $0x140] sm:$0xff] %v642_v41  ;;  %707 = vst [vmem:[%s1305_s17 + $0x148] sm:$0xff] %v643_v42  ;;  %v477_v54 = vrot.slane %v272_v40, %v1266_v2  ;;  %v265_v29 = vld [vmem:[%s1256_s8 + $0x1f8] sm:$0xff] }
  0x7b   : > { %708 = vst [vmem:[%s1305_s17 + $0x150] sm:$0xff] %v644_v43  ;;  %709 = vst [vmem:[%s1305_s17 + $0x158] sm:$0xff] %v645_v44  ;;  %v481_v55 = vrot.slane %v272_v40, %v1268_v3  ;;  %v485_v56 = vrot.slane %v272_v40, %v1270_v4  ;;  %v489_v57 = vrot.slane %v272_v40, %v1272_v5 }
  0x7c   : > { %710 = vst [vmem:[%s1305_s17 + $0x160] sm:$0xff] %v646_v47  ;;  %711 = vst [vmem:[%s1305_s17 + $0x168] sm:$0xff] %v647_v48  ;;  %v493_v61 = vrot.slane %v272_v40, %v1274_v6  ;;  %v497_v62 = vrot.slane %v272_v40, %v1276_v7  ;;  %v501_v63 = vrot.slane %v272_v40, %v1278_v8 }
  0x7d   : > { %712 = vst [vmem:[%s1305_s17 + $0x170] sm:$0xff] %v648_v49  ;;  %713 = vst [vmem:[%s1305_s17 + $0x178] sm:$0xff] %v649_v50  ;;  %v505_v0 = vrot.slane %v272_v40, %v1280_v9  ;;  %v650_v10 = vadd.f32 %v477_v54, %v250_v45  ;;  %v651_v11 = vadd.f32 %v481_v55, %v251_v46 }
  0x7e   : > { %v652_v12 = vadd.f32 %v485_v56, %v252_v51  ;;  %v653_v13 = vadd.f32 %v489_v57, %v253_v52  ;;  %v654_v16 = vadd.f32 %v493_v61, %v254_v53  ;;  %v655_v17 = vadd.f32 %v497_v62, %v255_v58 }
  0x7f   : > { %v656_v18 = vadd.f32 %v501_v63, %v256_v59  ;;  %v657_v19 = vadd.f32 %v505_v0, %v257_v60  ;;  %714 = vst [vmem:[%s1305_s17 + $0x180] sm:$0xff] %v650_v10  ;;  %715 = vst [vmem:[%s1305_s17 + $0x188] sm:$0xff] %v651_v11  ;;  %v509_v23 = vrot.slane %v273_v1, %v1266_v2 }
  0x80   : > { %716 = vst [vmem:[%s1305_s17 + $0x190] sm:$0xff] %v652_v12  ;;  %717 = vst [vmem:[%s1305_s17 + $0x198] sm:$0xff] %v653_v13  ;;  %v513_v24 = vrot.slane %v273_v1, %v1268_v3  ;;  %v517_v25 = vrot.slane %v273_v1, %v1270_v4  ;;  %v521_v26 = vrot.slane %v273_v1, %v1272_v5 }
  0x81   : > { %718 = vst [vmem:[%s1305_s17 + $0x1a0] sm:$0xff] %v654_v16  ;;  %719 = vst [vmem:[%s1305_s17 + $0x1a8] sm:$0xff] %v655_v17  ;;  %v525_v30 = vrot.slane %v273_v1, %v1274_v6  ;;  %v529_v2 = vrot.slane %v273_v1, %v1276_v7  ;;  %v533_v3 = vrot.slane %v273_v1, %v1278_v8 }
  0x82   : > { %720 = vst [vmem:[%s1305_s17 + $0x1b0] sm:$0xff] %v656_v18  ;;  %721 = vst [vmem:[%s1305_s17 + $0x1b8] sm:$0xff] %v657_v19  ;;  %v537_v4 = vrot.slane %v273_v1, %v1280_v9  ;;  %v658_v5 = vadd.f32 %v509_v23, %v258_v14  ;;  %v659_v31 = vadd.f32 %v513_v24, %v259_v15 }
  0x83   : > { %v660_v32 = vadd.f32 %v517_v25, %v260_v20  ;;  %v661_v33 = vadd.f32 %v521_v26, %v261_v21  ;;  %v662_v34 = vadd.f32 %v525_v30, %v262_v22  ;;  %v663_v35 = vadd.f32 %v529_v2, %v263_v27 }
  0x84   : > { %v664_v6 = vadd.f32 %v533_v3, %v264_v28  ;;  %v665_v36 = vadd.f32 %v537_v4, %v265_v29  ;;  %722 = vst [vmem:[%s1305_s17 + $0x1c0] sm:$0xff] %v658_v5  ;;  %723 = vst [vmem:[%s1305_s17 + $0x1c8] sm:$0xff] %v659_v31 }
  0x85   : > { %724 = vst [vmem:[%s1305_s17 + $0x1d0] sm:$0xff] %v660_v32  ;;  %725 = vst [vmem:[%s1305_s17 + $0x1d8] sm:$0xff] %v661_v33 }
  0x86   : > { %726 = vst [vmem:[%s1305_s17 + $0x1e0] sm:$0xff] %v662_v34  ;;  %727 = vst [vmem:[%s1305_s17 + $0x1e8] sm:$0xff] %v663_v35 }
  0x87   : > { %728 = vst [vmem:[%s1305_s17 + $0x1f0] sm:$0xff] %v664_v6  ;;  %729 = vst [vmem:[%s1305_s17 + $0x1f8] sm:$0xff] %v665_v36 }
  0x88   : > { %1006 = shalt.err (!%p1003_p5)
}
  0x89   : > { %s1007_s24 = scalar_lea.hbm %s1475_s4, 8192  ;;  %s1011_s30 = scalar_lea.hbm %s1534_s2, 16384 }
  0x8a   : > { %p1008_p10 = scmp.ne.s32.totalorder %s1475_s4, %s1007_s24  ;;  %p1012_p7 = scmp.lt.u32.totalorder %s1475_s4, %s1534_s2 }
  0x8b   : > { %p1013_p3 = scmp.lt.u32.totalorder %s1011_s30, %s1007_s24  ;;  %p1015_p2 = scmp.lt.u32.totalorder %s1007_s24, %s1475_s4 }
  0x8c   : > { %p1009_p4 = pnand %p1008_p10, %p1200_p13 }
  0x8d   : > { %p1014_p11 = por %p1013_p3, %p1012_p7 }
  0x8e   : > { %p1010_p1 = pneg %p1009_p4 }
  0x8f   : > { %p1016_p6 = por %p1015_p2, %p1014_p11 }
  0x91   : > { %p1017_p8 = pnand %p1016_p6, %p1010_p1 }
  0x93   : > { %1020 = shalt.err (!%p1017_p8)
}
  0x94   : > { %868 = dma.vmem_to_hbm [thread:$0]  (%p1200_p13), %s1477_s21, 8192, %s1475_s4, %s731_s5  }
  0x95 PF: > { %s759_s7 = sand.u32 1, %s1059_s9   ;;  %p1553_p9 = scmp.ne.s32.totalorder %s1542_s20, 0 }
  0x96   : > { %p1554_p12 = scmp.ge.s32.totalorder %s1079_s14, 2  ;;  %s760_s8 = scalar_lea.sflag [#allocation4], %s759_s7 }
  0x98   : > { %p879_p0 = pnand %p1554_p12, %p1553_p9 }
  0x9a   : > { %1054 = dma.done.wait (!%p879_p0), %s760_s8, 8192  }
  0x9b   : > { %1056 = vsyncadd (!%p879_p0), %s760_s8, 4294959104  ;;  %s19_s14 = sadd.s32 1, %s1079_s14   ;;  %s1555_s9 = smov %s1063_s10 }
  0x9c   : > { %p16_p5 = scmp.ge.s32.totalorder %s19_s14, 4   ;;  %s1556_s10 = smov %s1067_s11 }
  0x9d   : > { %s1557_s11 = smov %s1208_s28  ;;  %s1558_s12 = smov %s1075_s13 }
  0x9e   : > { %s1559_s13 = smov %s1561_s25  ;;  %18 = sbr.rel (!%p16_p5) target bundleno = 7 (0x7), region = 78 }
  0xa5   :  { %765 = vsyncpa [#allocation3], 1 }
  0xa6   :  { %767 = vsyncpa [#allocation3 + $0x1], 1 }
  0xa7   :  { %768 = vsyncpa [#allocation6], 1 }
  0xa8   :  { %769 = vsyncpa [#allocation4], 1 }
  0xa9   :  { %771 = vsyncpa [#allocation4 + $0x1], 1 }

</bundles_post_ra>
